<compile_context>
chip_gen: v7x
topology: tpu7x:2x2x1
jax: 0.10.0
libtpu: 0.0.40
codegen_flags: <defaults>
</compile_context>

<pallas_src>
import jax
import jax.numpy as jnp
from jax.experimental import pallas as pl
from jax.experimental.pallas import tpu as pltpu


def _round_up(x, m):
    return ((x + m - 1) // m) * m


# ---------------------------------------------------------------------------
# Kernel: one HypergraphConv layer (propagation-matrix form) + leaky_relu.
#   out_tile = leaky_relu( (P_tile @ X) @ W + b )
# ---------------------------------------------------------------------------
def _hyperconv_layer_kernel(p_ref, x_ref, w_ref, b_ref, out_ref):
    # (tm, N_pad) @ (N_pad, F_pad) -> (tm, F_pad)      [hyperedge propagation]
    px = jnp.dot(p_ref[...], x_ref[...], preferred_element_type=jnp.float32)
    # (tm, F_pad) @ (F_pad, Emb_pad) -> (tm, Emb_pad)  [linear] + bias
    y = jnp.dot(px, w_ref[...], preferred_element_type=jnp.float32) + b_ref[...]
    # F.leaky_relu_ (negative_slope = 0.01)
    out_ref[...] = jnp.where(y >= 0, y, 0.01 * y)


def _hyperconv_layer(P, x, w, b, *, tm):
    n_pad = P.shape[0]
    f_pad = x.shape[1]
    emb_pad = w.shape[1]
    assert n_pad % tm == 0

    return pl.pallas_call(
        _hyperconv_layer_kernel,
        out_shape=jax.ShapeDtypeStruct((n_pad, emb_pad), jnp.float32),
        grid_spec=pltpu.PrefetchScalarGridSpec(
            num_scalar_prefetch=0,
            grid=(n_pad // tm,),
            in_specs=[
                pl.BlockSpec((tm, n_pad), lambda i: (i, 0)),      # P row tile
                pl.BlockSpec((n_pad, f_pad), lambda i: (0, 0)),   # X (full)
                pl.BlockSpec((f_pad, emb_pad), lambda i: (0, 0)),  # W (full)
                pl.BlockSpec((1, emb_pad), lambda i: (0, 0)),      # bias
            ],
            out_specs=pl.BlockSpec((tm, emb_pad), lambda i: (i, 0)),
        ),
        compiler_params=pltpu.CompilerParams(
            dimension_semantics=("parallel",)),
    )(P, x, w, b)


# ---------------------------------------------------------------------------
# Forward pass: HyperGCN = conv1 -> leaky_relu -> conv2 -> leaky_relu
# ---------------------------------------------------------------------------
def hypergcn_forward(nodes_features, hyperedge_index, params, num_edges):
    """nodes_features: (N, feature_dim) f32; hyperedge_index: (2, nnz) int32.

    `num_edges` must be a static Python int (number of hyperedges).
    """
    w1, b1, w2, b2 = params
    N, F = nodes_features.shape
    Emb = w1.shape[1]
    E = int(num_edges)

    # Tile / padding choices: row tile of 256 (good for the 256x256 MXU on
    # v6e/v7x), lane axes padded to multiples of 128 for lane-dense tiles.
    TM = 256
    n_pad = _round_up(max(N, 8), TM)
    e_pad = _round_up(max(E, 1), 128)
    f_pad = _round_up(F, 128)
    emb_pad = _round_up(Emb, 128)

    # --- glue (plain JAX): dense normalized incidence -> propagation matrix.
    # H is built with scatter-add (duplicate (node, edge) pairs accumulate the
    # same way PyG's scatter does); padded rows/cols stay zero so they never
    # contaminate valid rows of the output.
    node_idx = hyperedge_index[0]
    edge_idx = hyperedge_index[1]
    H = jnp.zeros((n_pad, e_pad), jnp.float32).at[node_idx, edge_idx].add(1.0)
    D = jnp.sum(H, axis=1, keepdims=True)              # node degree     (N,1)
    B = jnp.sum(H, axis=0, keepdims=True)              # hyperedge degree (1,E)
    D_inv = jnp.where(D > 0, 1.0 / D, 0.0)
    B_inv = jnp.where(B > 0, 1.0 / B, 0.0)
    H_D = H * D_inv                                    # rows scaled     (N,E)
    H_BT = (H * B_inv).T                               # cols scaled + T (E,N)
    P = jnp.dot(H_D, H_BT)                             # (N_pad, N_pad), shared
                                                       # by both layers

    # --- zero-pad inputs / weights to lane-dense shapes.
    x_p = jnp.zeros((n_pad, f_pad), jnp.float32).at[:N, :F].set(nodes_features)
    w1_p = jnp.zeros((f_pad, emb_pad), jnp.float32).at[:F, :Emb].set(w1)
    b1_p = jnp.zeros((1, emb_pad), jnp.float32).at[0, :Emb].set(b1)
    w2_p = jnp.zeros((emb_pad, emb_pad), jnp.float32).at[:Emb, :Emb].set(w2)
    b2_p = jnp.zeros((1, emb_pad), jnp.float32).at[0, :Emb].set(b2)

    # --- two HypergraphConv layers (each already applies leaky_relu).
    y1 = _hyperconv_layer(P, x_p, w1_p, b1_p, tm=TM)
    y2 = _hyperconv_layer(P, y1, w2_p, b2_p, tm=TM)

    return y2[:N, :Emb]


def init_params(key, feature_dim, embedding_dim):
    k1, k2 = jax.random.split(key)
    # Glorot-style init for the conv Linear weights; PyG zero-inits the bias.
    w1 = jax.random.normal(k1, (feature_dim, embedding_dim), jnp.float32) * (
        (2.0 / (feature_dim + embedding_dim)) ** 0.5)
    b1 = jnp.zeros((embedding_dim,), jnp.float32)
    w2 = jax.random.normal(k2, (embedding_dim, embedding_dim), jnp.float32) * (
        (2.0 / (embedding_dim + embedding_dim)) ** 0.5)
    b2 = jnp.zeros((embedding_dim,), jnp.float32)
    return (w1, b1, w2, b2)


if __name__ == "__main__":
    key = jax.random.PRNGKey(0)
    feature_dim, embedding_dim = 32, 32
    N, E = 16, 8

    kx, kp = jax.random.split(key)
    nodes_features = jax.random.normal(kx, (N, feature_dim), jnp.float32)

    # Deterministic hyperedge incidence: node i belongs to edges (i % E) and
    # ((i // 2) % E).
    node_idx = jnp.concatenate([jnp.arange(N), jnp.arange(N)])
    edge_idx = jnp.concatenate([jnp.arange(N) % E, (jnp.arange(N) // 2) % E])
    hyperedge_index = jnp.stack([node_idx, edge_idx]).astype(jnp.int32)  # (2, 32)

    params = init_params(kp, feature_dim, embedding_dim)

    out = hypergcn_forward(nodes_features, hyperedge_index, params, num_edges=E)
    jax.block_until_ready(out)
    assert out.shape == (N, embedding_dim)
    assert bool(jnp.all(jnp.isfinite(out)))
    print("KERNEL_OK")
</pallas_src>

<mosaic_0001>
module attributes {stable_mosaic.version = 11 : i64} {
  func.func @_hyperconv_layer_kernel(%arg0: i32, %arg1: memref<256x256xf32, #tpu.memory_space<vmem>>, %arg2: memref<256x128xf32, #tpu.memory_space<vmem>>, %arg3: memref<128x128xf32, #tpu.memory_space<vmem>>, %arg4: memref<1x128xf32, #tpu.memory_space<vmem>>, %arg5: memref<256x128xf32, #tpu.memory_space<vmem>>) attributes {dimension_semantics = [#tpu.dimension_semantics<parallel>], iteration_bounds = array<i64: 1>, scalar_prefetch = 0 : i64, scratch_operands = 0 : i64, tpu.core_type = #tpu.core_type<tc>, window_params = [{transform_indices = @transform_0, window_bounds = array<i64: 256, 256>}, {pipeline_mode = #tpu.pipeline_mode<synchronous>, transform_indices = @transform_1, window_bounds = array<i64: 256, 128>}, {pipeline_mode = #tpu.pipeline_mode<synchronous>, transform_indices = @transform_2, window_bounds = array<i64: 128, 128>}, {pipeline_mode = #tpu.pipeline_mode<synchronous>, transform_indices = @transform_3, window_bounds = array<i64: 1, 128>}, {transform_indices = @transform_4, window_bounds = array<i64: 256, 128>}]} {
    %c0 = arith.constant 0 : index
    %c0_0 = arith.constant 0 : index
    %0 = vector.load %arg1[%c0, %c0_0] : memref<256x256xf32, #tpu.memory_space<vmem>>, vector<256x256xf32>
    %c0_1 = arith.constant 0 : index
    %c0_2 = arith.constant 0 : index
    %1 = vector.load %arg2[%c0_1, %c0_2] : memref<256x128xf32, #tpu.memory_space<vmem>>, vector<256x128xf32>
    %cst = arith.constant dense<0.000000e+00> : vector<256x128xf32>
    %2 = tpu.matmul %0, %1, %cst {dimension_numbers = #tpu.dot_dimension_numbers<[1], [0], [0], [1], [0, 0, 1, 1], [], []>} : vector<256x256xf32>, vector<256x128xf32>, vector<256x128xf32> -> vector<256x128xf32>
    %c0_3 = arith.constant 0 : index
    %c0_4 = arith.constant 0 : index
    %3 = vector.load %arg3[%c0_3, %c0_4] : memref<128x128xf32, #tpu.memory_space<vmem>>, vector<128x128xf32>
    %cst_5 = arith.constant dense<0.000000e+00> : vector<256x128xf32>
    %4 = tpu.matmul %2, %3, %cst_5 {dimension_numbers = #tpu.dot_dimension_numbers<[1], [0], [0], [1], [0, 0, 1, 1], [], []>} : vector<256x128xf32>, vector<128x128xf32>, vector<256x128xf32> -> vector<256x128xf32>
    %c0_6 = arith.constant 0 : index
    %c0_7 = arith.constant 0 : index
    %5 = vector.load %arg4[%c0_6, %c0_7] : memref<1x128xf32, #tpu.memory_space<vmem>>, vector<1x128xf32>
    %6 = vector.broadcast %5 : vector<1x128xf32> to vector<256x128xf32>
    %7 = arith.addf %4, %6 : vector<256x128xf32>
    %cst_8 = arith.constant 0.000000e+00 : f32
    %8 = vector.broadcast %cst_8 : f32 to vector<256x128xf32>
    %9 = arith.cmpf oge, %7, %8 : vector<256x128xf32>
    %cst_9 = arith.constant 0.00999999977 : f32
    %10 = vector.broadcast %cst_9 : f32 to vector<256x128xf32>
    %11 = arith.mulf %10, %7 : vector<256x128xf32>
    %12 = arith.select %9, %7, %11 : vector<256x128xi1>, vector<256x128xf32>
    %c0_10 = arith.constant 0 : index
    %c0_11 = arith.constant 0 : index
    %13 = vector.load %arg5[%c0_10, %c0_11] : memref<256x128xf32, #tpu.memory_space<vmem>>, vector<256x128xf32>
    tpu.vector_store %arg5[%c0_10, %c0_11], %12 {strides = array<i32>} : memref<256x128xf32, #tpu.memory_space<vmem>>, vector<256x128xf32>,
    return
  }
  func.func @transform_0(%arg0: i32) -> (i32, i32) {
    %c0_i32 = arith.constant 0 : i32
    %c0_i32_0 = arith.constant 0 : i32
    return %arg0, %c0_i32 : i32, i32
  }
  func.func @transform_1(%arg0: i32) -> (i32, i32) {
    %c0_i32 = arith.constant 0 : i32
    %c0_i32_0 = arith.constant 0 : i32
    %c0_i32_1 = arith.constant 0 : i32
    return %c0_i32, %c0_i32_0 : i32, i32
  }
  func.func @transform_2(%arg0: i32) -> (i32, i32) {
    %c0_i32 = arith.constant 0 : i32
    %c0_i32_0 = arith.constant 0 : i32
    %c0_i32_1 = arith.constant 0 : i32
    return %c0_i32, %c0_i32_0 : i32, i32
  }
  func.func @transform_3(%arg0: i32) -> (i32, i32) {
    %c0_i32 = arith.constant 0 : i32
    %c0_i32_0 = arith.constant 0 : i32
    %c0_i32_1 = arith.constant 0 : i32
    return %c0_i32, %c0_i32_0 : i32, i32
  }
  func.func @transform_4(%arg0: i32) -> (i32, i32) {
    %c0_i32 = arith.constant 0 : i32
    %c0_i32_0 = arith.constant 0 : i32
    return %arg0, %c0_i32 : i32, i32
  }
}

</mosaic_0001>

<bundles_post_ra>
// kernel: tpu_custom_call.1
= control target key start
LH: loop header
LB: loop body
LE: loop exit
PB: predicated region body
PF: predicated region fallthrough
CT: control target
= control target key end

     0   :  { %9 = vsyncpa [#allocation3], 0  ;;  %s1296_s0 = inlined_call_operand.hbm [shape: f32[256,256], index: 0, kind: input, shape index: {}]   ;;  %s1297_s1 = inlined_call_operand.hbm [shape: f32[256,128], index: 1, kind: input, shape index: {}]   ;;  %s1298_s2 = inlined_call_operand.hbm [shape: f32[128,128], index: 2, kind: input, shape index: {}]   ;;  %s1299_s3 = inlined_call_operand.vmem [shape: f32[1,128], index: 3, kind: input, shape index: {}]   ;;  %s1300_s4 = inlined_call_operand.hbm [shape: f32[256,128], index: 4, kind: output, shape index: {}]  }
   0x1   :  { %10 = vsyncpa [#allocation6], 0 }
   0x2   :  { %11 = vsyncpa [#allocation4], 0  ;;  %s1118_s15 = smov [#allocation5]   ;;  %s1024_s19 = scalar_lea.hbm %s1297_s1, 4096 }
   0x3   :  { %s29_s16 = sshll.u32 %s1118_s15, 4  ;;  %p1025_p0 = scmp.ne.s32.totalorder %s1297_s1, %s1024_s19  ;;  %s30_s16 = int_to_ptr.vmem [resolvable:$true] %s29_s16 }
   0x4   :  { %p1028_p1 = scmp.lt.u32.totalorder %s1024_s19, %s1297_s1 }
   0x6   :  { %p1030_p2 = pnand %p1028_p1, %p1025_p0 }
   0x8   :  { %1033 = shalt.err (!%p1030_p2)
}
   0x9   :  { %s1034_s24 = scalar_lea.vmem %s30_s16, 4096  ;;  %p1039_p4 = scmp.lt.s32.totalorder %s30_s16, %s30_s16 }
   0xa   :  { %p1035_p3 = scmp.ne.s32.totalorder %s30_s16, %s1034_s24  ;;  %p1040_p5 = scmp.lt.s32.totalorder %s1034_s24, %s1034_s24 }
   0xc   :  { %p1041_p6 = por %p1040_p5, %p1039_p4 }
   0xe   :  { %p1042_p7 = pnand %p1041_p6, %p1035_p3 }
  0x10   :  { %1045 = shalt.err (!%p1042_p7)
}
  0x11   :  { %s1119_s25 = smov 128   ;;  %s1120_s26 = smov 8  }
  0x12   :  { %35 = dma.hbm_to_vmem [thread:$0]  %s1297_s1, 4096, %s30_s16, [#allocation6], %s1119_s25, %s1119_s25, %s1120_s26  }
  0x13   :  { %s1121_s29 = smov [#allocation2]   ;;  %s1046_s7 = scalar_lea.hbm %s1296_s0, 8192 }
  0x14   :  { %s17_s30 = sshll.u32 %s1121_s29, 4  ;;  %p1047_p8 = scmp.ne.s32.totalorder %s1296_s0, %s1046_s7  ;;  %s18_s30 = int_to_ptr.vmem [resolvable:$true] %s17_s30 }
  0x15   :  { %p1050_p9 = scmp.lt.u32.totalorder %s1046_s7, %s1296_s0 }
  0x17   :  { %p1052_p10 = pnand %p1050_p9, %p1047_p8 }
  0x19   :  { %1055 = shalt.err (!%p1052_p10)
}
  0x1a   :  { %s1056_s12 = scalar_lea.vmem %s18_s30, 8192  ;;  %p1061_p12 = scmp.lt.s32.totalorder %s18_s30, %s18_s30 }
  0x1b   :  { %p1057_p11 = scmp.ne.s32.totalorder %s18_s30, %s1056_s12  ;;  %p1062_p13 = scmp.lt.s32.totalorder %s1056_s12, %s1056_s12 }
  0x1d   :  { %p1063_p0 = por %p1062_p13, %p1061_p12 }
  0x1f   :  { %p1064_p1 = pnand %p1063_p0, %p1057_p11 }
  0x21   :  { %1067 = shalt.err (!%p1064_p1)
}
  0x22   :  { %s1122_s1 = smov 256   ;;  %s1123_s13 = smov 16  }
  0x23   :  { %23 = dma.hbm_to_vmem [thread:$0]  %s1296_s0, 8192, %s18_s30, [#allocation3], %s1122_s1, %s1122_s1, %s1123_s13  }
  0x24   :  { %s1124_s16 = smov [#allocation7]   ;;  %s1068_s20 = scalar_lea.hbm %s1298_s2, 2048 }
  0x25   :  { %s41_s17 = sshll.u32 %s1124_s16, 4  ;;  %p1069_p2 = scmp.ne.s32.totalorder %s1298_s2, %s1068_s20  ;;  %s42_s17 = int_to_ptr.vmem [resolvable:$true] %s41_s17 }
  0x26   :  { %p1072_p3 = scmp.lt.u32.totalorder %s1068_s20, %s1298_s2 }
  0x28   :  { %p1074_p4 = pnand %p1072_p3, %p1069_p2 }
  0x2a   :  { %1077 = shalt.err (!%p1074_p4)
}
  0x2b   :  { %s1078_s27 = scalar_lea.vmem %s42_s17, 2048  ;;  %p1083_p6 = scmp.lt.s32.totalorder %s42_s17, %s42_s17 }
  0x2c   :  { %p1079_p5 = scmp.ne.s32.totalorder %s42_s17, %s1078_s27  ;;  %p1084_p7 = scmp.lt.s32.totalorder %s1078_s27, %s1078_s27 }
  0x2e   :  { %p1085_p8 = por %p1084_p7, %p1083_p6 }
  0x30   :  { %p1086_p9 = pnand %p1085_p8, %p1079_p5 }
  0x32   :  { %1089 = shalt.err (!%p1086_p9)
}
  0x33   :  { %47 = dma.hbm_to_vmem [thread:$0]  %s1298_s2, 2048, %s42_s17, [#allocation6], %s1119_s25, %s1119_s25, %s1120_s26  }
  0x34   :  { %1112 = dma.done.wait [#allocation3], 8192  }
  0x35   :  { %1113 = vsyncadd [#allocation3], 4294959104 }
  0x36   :  { %1114 = dma.done.wait [#allocation6], 6144  }
  0x37   :  { %1115 = vsyncadd [#allocation6], 4294961152  ;;  %v1125_v0 = vmov 0.0|0.0   ;;  %v123_v1 = vld [vmem:[#allocation5] sm:$0xff]  ;;  %v124_v2 = vld [vmem:[#allocation5 + $0x8] sm:$0xff] }
  0x38   :  { %903 = vmatprep.subr.bf16.mxu0 %v1125_v0  ;;  %983 = vmatprep.subr.bf16.mxu1 %v1125_v0  ;;  %v125_v3 = vld [vmem:[#allocation5 + $0x10] sm:$0xff]  ;;  %v904_v4 = vpack.c.bf16 %v124_v2, %v123_v1  ;;  %v126_v5 = vld [vmem:[#allocation5 + $0x18] sm:$0xff]  ;;  %v127_v7 = vld [vmem:[#allocation5 + $0x20] sm:$0xff] }
  0x39   :  { %v907_v6 = vpack.c.bf16 %v126_v5, %v125_v3  ;;  %v128_v8 = vld [vmem:[#allocation5 + $0x28] sm:$0xff]  ;;  %v129_v10 = vld [vmem:[#allocation5 + $0x30] sm:$0xff]  ;;  %v130_v11 = vld [vmem:[#allocation5 + $0x38] sm:$0xff] }
  0x3a   :  { %905 = vmatpush1.bf16.msra.mxu0 %v904_v4  ;;  %999 = vmatpush1.bf16.msra.mxu1 %v904_v4  ;;  %v910_v9 = vpack.c.bf16 %v128_v8, %v127_v7  ;;  %v60_v12 = vld [vmem:[#allocation2 + $0x8] sm:$0xff]  ;;  %v913_v13 = vpack.c.bf16 %v130_v11, %v129_v10  ;;  %v131_v14 = vld [vmem:[#allocation5 + $0x40] sm:$0xff]  ;;  %v133_v17 = vld [vmem:[#allocation5 + $0x50] sm:$0xff] }
  0x3b   :  { %906 = vmatprep.subr.bf16.mxu0 %v1125_v0  ;;  %984 = vmatprep.subr.bf16.mxu1 %v1125_v0  ;;  %v132_v15 = vld [vmem:[#allocation5 + $0x48] sm:$0xff]  ;;  %v134_v18 = vld [vmem:[#allocation5 + $0x58] sm:$0xff]  ;;  %v135_v20 = vld [vmem:[#allocation5 + $0x60] sm:$0xff] }
  0x3c   :  { %219 = vmatprep.mubr.f32.mxu0 %v60_v12  ;;  %v916_v16 = vpack.c.bf16 %v132_v15, %v131_v14  ;;  %v919_v19 = vpack.c.bf16 %v134_v18, %v133_v17  ;;  %v136_v21 = vld [vmem:[#allocation5 + $0x68] sm:$0xff]  ;;  %v137_v23 = vld [vmem:[#allocation5 + $0x70] sm:$0xff]  ;;  %v138_v24 = vld [vmem:[#allocation5 + $0x78] sm:$0xff] }
  0x3d   :  { %v922_v22 = vpack.c.bf16 %v136_v21, %v135_v20  ;;  %v108_v25 = vld [vmem:[#allocation2 + $0x188] sm:$0xff]  ;;  %v925_v26 = vpack.c.bf16 %v138_v24, %v137_v23  ;;  %v139_v27 = vld [vmem:[#allocation5 + $0x80] sm:$0xff]  ;;  %v141_v30 = vld [vmem:[#allocation5 + $0x90] sm:$0xff] }
  0x3e   :  { %908 = vmatpush1.bf16.msra.mxu0 %v907_v6  ;;  %1000 = vmatpush1.bf16.msra.mxu1 %v907_v6  ;;  %v140_v28 = vld [vmem:[#allocation5 + $0x88] sm:$0xff]  ;;  %v142_v31 = vld [vmem:[#allocation5 + $0x98] sm:$0xff]  ;;  %v143_v33 = vld [vmem:[#allocation5 + $0xa0] sm:$0xff] }
  0x3f   :  { %909 = vmatprep.subr.bf16.mxu0 %v1125_v0  ;;  %985 = vmatprep.subr.bf16.mxu1 %v1125_v0  ;;  %v928_v29 = vpack.c.bf16 %v140_v28, %v139_v27  ;;  %v931_v32 = vpack.c.bf16 %v142_v31, %v141_v30  ;;  %v144_v34 = vld [vmem:[#allocation5 + $0xa8] sm:$0xff]  ;;  %v145_v36 = vld [vmem:[#allocation5 + $0xb0] sm:$0xff]  ;;  %v146_v37 = vld [vmem:[#allocation5 + $0xb8] sm:$0xff] }
  0x40   :  { %339 = vmatprep.mubr.f32.mxu1 %v108_v25  ;;  %v934_v35 = vpack.c.bf16 %v144_v34, %v143_v33  ;;  %v937_v38 = vpack.c.bf16 %v146_v37, %v145_v36  ;;  %v147_v39 = vld [vmem:[#allocation5 + $0xc0] sm:$0xff]  ;;  %v148_v40 = vld [vmem:[#allocation5 + $0xc8] sm:$0xff]  ;;  %v149_v42 = vld [vmem:[#allocation5 + $0xd0] sm:$0xff] }
  0x41   :  { %v940_v41 = vpack.c.bf16 %v148_v40, %v147_v39  ;;  %v150_v43 = vld [vmem:[#allocation5 + $0xd8] sm:$0xff]  ;;  %v151_v45 = vld [vmem:[#allocation5 + $0xe0] sm:$0xff]  ;;  %v152_v46 = vld [vmem:[#allocation5 + $0xe8] sm:$0xff] }
  0x42   :  { %911 = vmatpush1.bf16.msra.mxu0 %v910_v9  ;;  %1001 = vmatpush1.bf16.msra.mxu1 %v910_v9  ;;  %v943_v44 = vpack.c.bf16 %v150_v43, %v149_v42  ;;  %v946_v47 = vpack.c.bf16 %v152_v46, %v151_v45  ;;  %v153_v48 = vld [vmem:[#allocation5 + $0xf0] sm:$0xff]  ;;  %v154_v49 = vld [vmem:[#allocation5 + $0xf8] sm:$0xff]  ;;  %v380_v50 = vld [vmem:[#allocation7] sm:$0xff] }
  0x43   :  { %912 = vmatprep.subr.bf16.mxu0 %v1125_v0  ;;  %986 = vmatprep.subr.bf16.mxu1 %v1125_v0  ;;  %v381_v51 = vld [vmem:[#allocation7 + $0x8] sm:$0xff]  ;;  %v949_v52 = vpack.c.bf16 %v154_v49, %v153_v48  ;;  %v382_v54 = vld [vmem:[#allocation7 + $0x10] sm:$0xff]  ;;  %v383_v55 = vld [vmem:[#allocation7 + $0x18] sm:$0xff] }
  0x44   :  { %v951_v53 = vpack.c.bf16 %v381_v51, %v380_v50  ;;  %v59_v56 = vld [vmem:[#allocation2] sm:$0xff]  ;;  %v62_v57 = vld [vmem:[#allocation2 + $0x18] sm:$0xff]  ;;  %v955_v60 = vpack.c.bf16 %v383_v55, %v382_v54  ;;  %v385_v62 = vld [vmem:[#allocation7 + $0x28] sm:$0xff] }
  0x45   :  { %v107_v58 = vld [vmem:[#allocation2 + $0x180] sm:$0xff]  ;;  %v110_v59 = vld [vmem:[#allocation2 + $0x198] sm:$0xff]  ;;  %v61_v63 = vld [vmem:[#allocation2 + $0x10] sm:$0xff] }
  0x46   :  { %914 = vmatpush1.bf16.msra.mxu0 %v913_v13  ;;  %1002 = vmatpush1.bf16.msra.mxu1 %v913_v13  ;;  %v384_v61 = vld [vmem:[#allocation7 + $0x20] sm:$0xff]  ;;  %v64_v1 = vld [vmem:[#allocation2 + $0x28] sm:$0xff]  ;;  %v386_v4 = vld [vmem:[#allocation7 + $0x30] sm:$0xff] }
  0x47   :  { %915 = vmatprep.subr.bf16.mxu0 %v1125_v0  ;;  %987 = vmatprep.subr.bf16.mxu1 %v1125_v0  ;;  %v112_v2 = vld [vmem:[#allocation2 + $0x1a8] sm:$0xff]  ;;  %v959_v3 = vpack.c.bf16 %v385_v62, %v384_v61  ;;  %v387_v5 = vld [vmem:[#allocation7 + $0x38] sm:$0xff]  ;;  %v63_v6 = vld [vmem:[#allocation2 + $0x20] sm:$0xff] }
  0x48   :  { %v66_v7 = vld [vmem:[#allocation2 + $0x38] sm:$0xff]  ;;  %v111_v8 = vld [vmem:[#allocation2 + $0x1a0] sm:$0xff]  ;;  %v963_v10 = vpack.c.bf16 %v387_v5, %v386_v4  ;;  %v389_v12 = vld [vmem:[#allocation7 + $0x48] sm:$0xff] }
  0x49   :  { %v114_v9 = vld [vmem:[#allocation2 + $0x1b8] sm:$0xff]  ;;  %v388_v11 = vld [vmem:[#allocation7 + $0x40] sm:$0xff]  ;;  %v65_v13 = vld [vmem:[#allocation2 + $0x30] sm:$0xff] }
  0x4a   :  { %917 = vmatpush1.bf16.msra.mxu0 %v916_v16  ;;  %1003 = vmatpush1.bf16.msra.mxu1 %v916_v16  ;;  %v68_v14 = vld [vmem:[#allocation2 + $0x48] sm:$0xff]  ;;  %v113_v15 = vld [vmem:[#allocation2 + $0x1b0] sm:$0xff]  ;;  %v967_v17 = vpack.c.bf16 %v389_v12, %v388_v11  ;;  %v67_v20 = vld [vmem:[#allocation2 + $0x40] sm:$0xff] }
  0x4b   :  { %918 = vmatprep.subr.bf16.mxu0 %v1125_v0  ;;  %988 = vmatprep.subr.bf16.mxu1 %v1125_v0  ;;  %v116_v16 = vld [vmem:[#allocation2 + $0x1c8] sm:$0xff]  ;;  %v390_v18 = vld [vmem:[#allocation7 + $0x50] sm:$0xff]  ;;  %v70_v21 = vld [vmem:[#allocation2 + $0x58] sm:$0xff] }
  0x4c   :  { %v118_v23 = vld [vmem:[#allocation2 + $0x1d8] sm:$0xff]  ;;  %v392_v25 = vld [vmem:[#allocation7 + $0x60] sm:$0xff]  ;;  %v69_v27 = vld [vmem:[#allocation2 + $0x50] sm:$0xff] }
  0x4d   :  { %v72_v28 = vld [vmem:[#allocation2 + $0x68] sm:$0xff]  ;;  %v74_v33 = vld [vmem:[#allocation2 + $0x78] sm:$0xff]  ;;  %v119_v34 = vld [vmem:[#allocation2 + $0x1e0] sm:$0xff] }
  0x4e   :  { %920 = vmatpush1.bf16.msra.mxu0 %v919_v19  ;;  %1004 = vmatpush1.bf16.msra.mxu1 %v919_v19  ;;  %v391_v19 = vld [vmem:[#allocation7 + $0x58] sm:$0xff]  ;;  %v120_v30 = vld [vmem:[#allocation2 + $0x1e8] sm:$0xff]  ;;  %v73_v36 = vld [vmem:[#allocation2 + $0x70] sm:$0xff] }
  0x4f   :  { %921 = vmatprep.subr.bf16.mxu0 %v1125_v0  ;;  %989 = vmatprep.subr.bf16.mxu1 %v1125_v0  ;;  %v971_v24 = vpack.c.bf16 %v391_v19, %v390_v18  ;;  %v76_v37 = vld [vmem:[#allocation2 + $0x88] sm:$0xff]  ;;  %v75_v39 = vld [vmem:[#allocation2 + $0x80] sm:$0xff]  ;;  %v78_v40 = vld [vmem:[#allocation2 + $0x98] sm:$0xff] }
  0x50   :  { %v80_v42 = vld [vmem:[#allocation2 + $0xa8] sm:$0xff]  ;;  %v79_v43 = vld [vmem:[#allocation2 + $0xa0] sm:$0xff]  ;;  %v81_v45 = vld [vmem:[#allocation2 + $0xb0] sm:$0xff] }
  0x51   :  { %v84_v46 = vld [vmem:[#allocation2 + $0xc8] sm:$0xff]  ;;  %v86_v48 = vld [vmem:[#allocation2 + $0xd8] sm:$0xff]  ;;  %v85_v49 = vld [vmem:[#allocation2 + $0xd0] sm:$0xff] }
  0x52   :  { %923 = vmatpush1.bf16.msra.mxu0 %v922_v22  ;;  %1005 = vmatpush1.bf16.msra.mxu1 %v922_v22  ;;  %v115_v22 = vld [vmem:[#allocation2 + $0x1c0] sm:$0xff]  ;;  %v88_v50 = vld [vmem:[#allocation2 + $0xe8] sm:$0xff]  ;;  %v97_v61 = vld [vmem:[#allocation2 + $0x130] sm:$0xff] }
  0x53   :  { %924 = vmatprep.subr.bf16.mxu0 %v1125_v0  ;;  %990 = vmatprep.subr.bf16.mxu1 %v1125_v0  ;;  %v87_v51 = vld [vmem:[#allocation2 + $0xe0] sm:$0xff]  ;;  %v92_v54 = vld [vmem:[#allocation2 + $0x108] sm:$0xff] }
  0x54   :  { %v91_v55 = vld [vmem:[#allocation2 + $0x100] sm:$0xff]  ;;  %v100_v62 = vld [vmem:[#allocation2 + $0x148] sm:$0xff] }
  0x55   :  { %v104_v4 = vld [vmem:[#allocation2 + $0x168] sm:$0xff] }
  0x56   :  { %926 = vmatpush1.bf16.msra.mxu0 %v925_v26  ;;  %1006 = vmatpush1.bf16.msra.mxu1 %v925_v26  ;;  %v393_v26 = vld [vmem:[#allocation7 + $0x68] sm:$0xff] }
  0x57   :  { %927 = vmatprep.subr.bf16.mxu0 %v1125_v0  ;;  %991 = vmatprep.subr.bf16.mxu1 %v1125_v0  ;;  %v975_v31 = vpack.c.bf16 %v393_v26, %v392_v25 }
  0x5a   :  { %929 = vmatpush1.bf16.msra.mxu0 %v928_v29  ;;  %1007 = vmatpush1.bf16.msra.mxu1 %v928_v29  ;;  %v117_v29 = vld [vmem:[#allocation2 + $0x1d0] sm:$0xff] }
  0x5b   :  { %930 = vmatprep.subr.bf16.mxu0 %v1125_v0  ;;  %992 = vmatprep.subr.bf16.mxu1 %v1125_v0 }
  0x5e   :  { %932 = vmatpush1.bf16.msra.mxu0 %v931_v32  ;;  %1008 = vmatpush1.bf16.msra.mxu1 %v931_v32  ;;  %v71_v32 = vld [vmem:[#allocation2 + $0x60] sm:$0xff] }
  0x5f   :  { %933 = vmatprep.subr.bf16.mxu0 %v1125_v0  ;;  %993 = vmatprep.subr.bf16.mxu1 %v1125_v0 }
  0x62   :  { %935 = vmatpush1.bf16.msra.mxu0 %v934_v35  ;;  %1009 = vmatpush1.bf16.msra.mxu1 %v934_v35  ;;  %v122_v35 = vld [vmem:[#allocation2 + $0x1f8] sm:$0xff] }
  0x63   :  { %936 = vmatprep.subr.bf16.mxu0 %v1125_v0  ;;  %994 = vmatprep.subr.bf16.mxu1 %v1125_v0 }
  0x66   :  { %938 = vmatpush1.bf16.msra.mxu0 %v937_v38  ;;  %1010 = vmatpush1.bf16.msra.mxu1 %v937_v38  ;;  %v121_v38 = vld [vmem:[#allocation2 + $0x1f0] sm:$0xff] }
  0x67   :  { %939 = vmatprep.subr.bf16.mxu0 %v1125_v0  ;;  %995 = vmatprep.subr.bf16.mxu1 %v1125_v0 }
  0x6a   :  { %941 = vmatpush1.bf16.msra.mxu0 %v940_v41  ;;  %1011 = vmatpush1.bf16.msra.mxu1 %v940_v41  ;;  %v77_v41 = vld [vmem:[#allocation2 + $0x90] sm:$0xff] }
  0x6b   :  { %942 = vmatprep.subr.bf16.mxu0 %v1125_v0  ;;  %996 = vmatprep.subr.bf16.mxu1 %v1125_v0 }
  0x6e   :  { %944 = vmatpush1.bf16.msra.mxu0 %v943_v44  ;;  %1012 = vmatpush1.bf16.msra.mxu1 %v943_v44  ;;  %v82_v44 = vld [vmem:[#allocation2 + $0xb8] sm:$0xff] }
  0x6f   :  { %945 = vmatprep.subr.bf16.mxu0 %v1125_v0  ;;  %997 = vmatprep.subr.bf16.mxu1 %v1125_v0 }
  0x72   :  { %947 = vmatpush1.bf16.msra.mxu0 %v946_v47  ;;  %1013 = vmatpush1.bf16.msra.mxu1 %v946_v47  ;;  %v83_v47 = vld [vmem:[#allocation2 + $0xc0] sm:$0xff] }
  0x73   :  { %948 = vmatprep.subr.bf16.mxu0 %v1125_v0  ;;  %998 = vmatprep.subr.bf16.mxu1 %v1125_v0  ;;  %v109_v0 = vld [vmem:[#allocation2 + $0x190] sm:$0xff] }
  0x76   :  { %950 = vmatpush1.bf16.msra.mxu0 %v949_v52  ;;  %1014 = vmatpush1.bf16.msra.mxu1 %v949_v52  ;;  %v90_v52 = vld [vmem:[#allocation2 + $0xf8] sm:$0xff] }
  0x77   :  { %952 = vmatprep.subr.bf16.mxu1 %v951_v53 }
  0x79   :  { %220 = vmatmul.mubr.f32.vlgmr.msra.gmra.mrb[0].mxu0 %v59_v56  ;;  %340 = vmatmul.mubr.f32.vlgmr.msra.gmra.mrb[0].mxu1 %v107_v58  ;;  %v94_v56 = vld [vmem:[#allocation2 + $0x118] sm:$0xff]  ;;  %v96_v58 = vld [vmem:[#allocation2 + $0x128] sm:$0xff] }
  0x7a   :  { %224 = vmatprep.mubr.f32.mxu0 %v62_v57  ;;  %344 = vmatprep.mubr.f32.mxu1 %v110_v59  ;;  %v93_v57 = vld [vmem:[#allocation2 + $0x110] sm:$0xff]  ;;  %v95_v59 = vld [vmem:[#allocation2 + $0x120] sm:$0xff] }
  0x7b   :  { %954 = vmatpush3.bf16.msra.mxu1 %v951_v53  ;;  %v89_v53 = vld [vmem:[#allocation2 + $0xf0] sm:$0xff] }
  0x7c   :  { %956 = vmatprep.subr.bf16.mxu1 %v955_v60 }
  0x7d   :  { %225 = vmatmul.mubr.f32.gmra.mrb[2].mxu0 %v61_v63  ;;  %345 = vmatmul.mubr.f32.gmra.mrb[2].mxu1 %v109_v0  ;;  %v99_v63 = vld [vmem:[#allocation2 + $0x140] sm:$0xff]  ;;  %v101_v0 = vld [vmem:[#allocation2 + $0x150] sm:$0xff] }
  0x7e   :  { %229 = vmatprep.mubr.f32.mxu0 %v64_v1  ;;  %349 = vmatprep.mubr.f32.mxu1 %v112_v2  ;;  %v102_v1 = vld [vmem:[#allocation2 + $0x158] sm:$0xff]  ;;  %v394_v2 = vld [vmem:[#allocation7 + $0x70] sm:$0xff] }
  0x7f   :  { %958 = vmatpush3.bf16.msra.mxu1 %v955_v60  ;;  %v98_v60 = vld [vmem:[#allocation2 + $0x138] sm:$0xff] }
  0x80   :  { %960 = vmatprep.subr.bf16.mxu1 %v959_v3 }
  0x81   :  { %230 = vmatmul.mubr.f32.gmra.mrb[4].mxu0 %v63_v6  ;;  %350 = vmatmul.mubr.f32.gmra.mrb[4].mxu1 %v111_v8  ;;  %v103_v6 = vld [vmem:[#allocation2 + $0x160] sm:$0xff]  ;;  %v105_v8 = vld [vmem:[#allocation2 + $0x170] sm:$0xff] }
  0x82   :  { %234 = vmatprep.mubr.f32.mxu0 %v66_v7  ;;  %354 = vmatprep.mubr.f32.mxu1 %v114_v9  ;;  %v106_v7 = vld [vmem:[#allocation2 + $0x178] sm:$0xff] }
  0x83   :  { %962 = vmatpush3.bf16.msra.mxu1 %v959_v3  ;;  %v395_v3 = vld [vmem:[#allocation7 + $0x78] sm:$0xff] }
  0x84   :  { %964 = vmatprep.subr.bf16.mxu1 %v963_v10  ;;  %v979_v5 = vpack.c.bf16 %v395_v3, %v394_v2 }
  0x85   :  { %235 = vmatmul.mubr.f32.gmra.mrb[6].mxu0 %v65_v13  ;;  %355 = vmatmul.mubr.f32.gmra.mrb[6].mxu1 %v113_v15 }
  0x86   :  { %239 = vmatprep.mubr.f32.mxu0 %v68_v14  ;;  %359 = vmatprep.mubr.f32.mxu1 %v116_v16 }
  0x87   :  { %966 = vmatpush3.bf16.msra.mxu1 %v963_v10 }
  0x88   :  { %968 = vmatprep.subr.bf16.mxu1 %v967_v17 }
  0x89   :  { %240 = vmatmul.mubr.f32.gmra.mrb[8].mxu0 %v67_v20  ;;  %360 = vmatmul.mubr.f32.gmra.mrb[8].mxu1 %v115_v22 }
  0x8a   :  { %244 = vmatprep.mubr.f32.mxu0 %v70_v21  ;;  %364 = vmatprep.mubr.f32.mxu1 %v118_v23 }
  0x8b   :  { %970 = vmatpush3.bf16.msra.mxu1 %v967_v17 }
  0x8c   :  { %972 = vmatprep.subr.bf16.mxu1 %v971_v24 }
  0x8d   :  { %245 = vmatmul.mubr.f32.gmra.mrb[10].mxu0 %v69_v27  ;;  %365 = vmatmul.mubr.f32.gmra.mrb[10].mxu1 %v117_v29 }
  0x8e   :  { %249 = vmatprep.mubr.f32.mxu0 %v72_v28  ;;  %369 = vmatprep.mubr.f32.mxu1 %v120_v30 }
  0x8f   :  { %974 = vmatpush3.bf16.msra.mxu1 %v971_v24 }
  0x90   :  { %976 = vmatprep.subr.bf16.mxu1 %v975_v31 }
  0x91   :  { %250 = vmatmul.mubr.f32.gmra.mrb[12].mxu0 %v71_v32  ;;  %370 = vmatmul.mubr.f32.gmra.mrb[12].mxu1 %v119_v34 }
  0x92   :  { %254 = vmatprep.mubr.f32.mxu0 %v74_v33  ;;  %374 = vmatprep.mubr.f32.mxu1 %v122_v35 }
  0x93   :  { %978 = vmatpush3.bf16.msra.mxu1 %v975_v31 }
  0x94   :  { %980 = vmatprep.subr.bf16.mxu1 %v979_v5 }
  0x95   :  { %255 = vmatmul.mubr.f32.gmra.mrb[14].mxu0 %v73_v36  ;;  %375 = vmatmul.mubr.f32.gmra.mrb[14].mxu1 %v121_v38 }
  0x96   :  { %259 = vmatprep.mubr.f32.mxu0 %v76_v37 }
  0x97   :  { %982 = vmatpush3.bf16.msra.mxu1 %v979_v5 }
  0x99   :  { %260 = vmatmul.mubr.f32.gmra.mrb[16].mxu0 %v75_v39 }
  0x9a   :  { %264 = vmatprep.mubr.f32.mxu0 %v78_v40 }
  0x9d   :  { %265 = vmatmul.mubr.f32.gmra.mrb[18].mxu0 %v77_v41 }
  0x9e   :  { %269 = vmatprep.mubr.f32.mxu0 %v80_v42 }
  0xa1   :  { %270 = vmatmul.mubr.f32.gmra.mrb[20].mxu0 %v79_v43 }
  0xa2   :  { %274 = vmatprep.mubr.f32.mxu0 %v82_v44 }
  0xa5   :  { %275 = vmatmul.mubr.f32.gmra.mrb[22].mxu0 %v81_v45 }
  0xa6   :  { %279 = vmatprep.mubr.f32.mxu0 %v84_v46 }
  0xa9   :  { %280 = vmatmul.mubr.f32.gmra.mrb[24].mxu0 %v83_v47 }
  0xaa   :  { %284 = vmatprep.mubr.f32.mxu0 %v86_v48 }
  0xad   :  { %285 = vmatmul.mubr.f32.gmra.mrb[26].mxu0 %v85_v49 }
  0xae   :  { %289 = vmatprep.mubr.f32.mxu0 %v88_v50 }
  0xb1   :  { %290 = vmatmul.mubr.f32.gmra.mrb[28].mxu0 %v87_v51 }
  0xb2   :  { %294 = vmatprep.mubr.f32.mxu0 %v90_v52 }
  0xb5   :  { %295 = vmatmul.mubr.f32.gmra.mrb[30].mxu0 %v89_v53 }
  0xb6   :  { %299 = vmatprep.mubr.f32.mxu0 %v92_v54 }
  0xb9   :  { %300 = vmatmul.mubr.f32.gmra.mrb[32].mxu0 %v91_v55 }
  0xba   :  { %304 = vmatprep.mubr.f32.mxu0 %v94_v56 }
  0xbd   :  { %305 = vmatmul.mubr.f32.gmra.mrb[34].mxu0 %v93_v57 }
  0xbe   :  { %309 = vmatprep.mubr.f32.mxu0 %v96_v58 }
  0xc1   :  { %310 = vmatmul.mubr.f32.gmra.mrb[36].mxu0 %v95_v59 }
  0xc2   :  { %314 = vmatprep.mubr.f32.mxu0 %v98_v60 }
  0xc5   :  { %315 = vmatmul.mubr.f32.gmra.mrb[38].mxu0 %v97_v61 }
  0xc6   :  { %319 = vmatprep.mubr.f32.mxu0 %v100_v62 }
  0xc9   :  { %320 = vmatmul.mubr.f32.gmra.mrb[40].mxu0 %v99_v63 }
  0xca   :  { %324 = vmatprep.mubr.f32.mxu0 %v102_v1 }
  0xcd   :  { %325 = vmatmul.mubr.f32.gmra.mrb[42].mxu0 %v101_v0 }
  0xce   :  { %329 = vmatprep.mubr.f32.mxu0 %v104_v4 }
  0xd1   :  { %330 = vmatmul.mubr.f32.gmra.mrb[44].mxu0 %v103_v6 }
  0xd2   :  { %334 = vmatprep.mubr.f32.mxu0 %v106_v7 }
  0xd5   :  { %335 = vmatmul.mubr.f32.gmra.mrb[46].mxu0 %v105_v8 }
 0x14c   :  { %v221_v9 = vpop.f32.mrb[0].mxu0  ;;  %v1226_v11 = vpop.f32.mrb[0].mxu1 }
 0x14d   :  { %v223_v10 = vpop.f32.mrb[1].mxu0  ;;  %855 = vmatprep.mubr.f32.mxu1 %v221_v9  ;;  %v343_v12 = vpop.f32.mrb[1].mxu1  ;;  %v1247_v9 = vld [vmem:[%s1299_s3] ss:$0 sm:$0xff]  ;;  %s1126_s3 = smov [#allocation8]  }
 0x14e   :  { %s761_s30 = sshll.u32 %s1126_s3, 4  ;;  %s762_s30 = int_to_ptr.vmem [resolvable:$true] %s761_s30 }
 0x14f   :  { %s1090_s5 = scalar_lea.vmem %s762_s30, 4096  ;;  %p1095_p11 = scmp.lt.s32.totalorder %s762_s30, %s762_s30 }
 0x150   :  { %v226_v13 = vpop.f32.mrb[2].mxu0  ;;  %v1228_v15 = vpop.f32.mrb[2].mxu1  ;;  %p1091_p10 = scmp.ne.s32.totalorder %s762_s30, %s1090_s5  ;;  %p1096_p12 = scmp.lt.s32.totalorder %s1090_s5, %s1090_s5 }
 0x151   :  { %v228_v14 = vpop.f32.mrb[3].mxu0  ;;  %856 = vmatmul.mubr.f32.vlgmr.msra.gmra.mrb[16].mxu1 %v226_v13  ;;  %v348_v16 = vpop.f32.mrb[3].mxu1 }
 0x152   :  { %p1097_p13 = por %p1096_p12, %p1095_p11 }
 0x154   :  { %v231_v17 = vpop.f32.mrb[4].mxu0  ;;  %v1230_v19 = vpop.f32.mrb[4].mxu1  ;;  %p1098_p0 = pnand %p1097_p13, %p1091_p10 }
 0x155   :  { %v233_v18 = vpop.f32.mrb[5].mxu0  ;;  %858 = vmatprep.mubr.f32.mxu1 %v231_v17  ;;  %v353_v20 = vpop.f32.mrb[5].mxu1 }
 0x158   :  { %v236_v21 = vpop.f32.mrb[6].mxu0  ;;  %v1232_v23 = vpop.f32.mrb[6].mxu1 }
 0x159   :  { %v238_v22 = vpop.f32.mrb[7].mxu0  ;;  %859 = vmatmul.mubr.f32.gmra.mrb[18].mxu1 %v236_v21  ;;  %v358_v24 = vpop.f32.mrb[7].mxu1 }
 0x15c   :  { %v241_v25 = vpop.f32.mrb[8].mxu0  ;;  %v1234_v27 = vpop.f32.mrb[8].mxu1 }
 0x15d   :  { %v243_v26 = vpop.f32.mrb[9].mxu0  ;;  %861 = vmatprep.mubr.f32.mxu1 %v241_v25  ;;  %v363_v28 = vpop.f32.mrb[9].mxu1 }
 0x160   :  { %v246_v29 = vpop.f32.mrb[10].mxu0  ;;  %v1236_v31 = vpop.f32.mrb[10].mxu1 }
 0x161   :  { %v248_v30 = vpop.f32.mrb[11].mxu0  ;;  %862 = vmatmul.mubr.f32.gmra.mrb[20].mxu1 %v246_v29  ;;  %v368_v32 = vpop.f32.mrb[11].mxu1 }
 0x164   :  { %v251_v33 = vpop.f32.mrb[12].mxu0  ;;  %v371_v35 = vpop.f32.mrb[12].mxu1 }
 0x165   :  { %v253_v34 = vpop.f32.mrb[13].mxu0  ;;  %864 = vmatprep.mubr.f32.mxu1 %v251_v33  ;;  %v373_v36 = vpop.f32.mrb[13].mxu1 }
 0x168   :  { %v256_v37 = vpop.f32.mrb[14].mxu0  ;;  %v376_v39 = vpop.f32.mrb[14].mxu1 }
 0x169   :  { %v258_v38 = vpop.f32.mrb[15].mxu0  ;;  %865 = vmatmul.mubr.f32.gmra.mrb[22].mxu1 %v256_v37  ;;  %v378_v40 = vpop.f32.mrb[15].mxu1 }
 0x16c   :  { %v261_v41 = vpop.f32.mrb[16].mxu0 }
 0x16d   :  { %v263_v42 = vpop.f32.mrb[17].mxu0  ;;  %867 = vmatprep.mubr.f32.mxu1 %v261_v41 }
 0x170   :  { %v266_v43 = vpop.f32.mrb[18].mxu0 }
 0x171   :  { %v268_v44 = vpop.f32.mrb[19].mxu0  ;;  %868 = vmatmul.mubr.f32.gmra.mrb[24].mxu1 %v266_v43 }
 0x174   :  { %v271_v45 = vpop.f32.mrb[20].mxu0 }
 0x175   :  { %v273_v46 = vpop.f32.mrb[21].mxu0  ;;  %870 = vmatprep.mubr.f32.mxu1 %v271_v45 }
 0x178   :  { %v276_v47 = vpop.f32.mrb[22].mxu0 }
 0x179   :  { %v278_v48 = vpop.f32.mrb[23].mxu0  ;;  %871 = vmatmul.mubr.f32.gmra.mrb[26].mxu1 %v276_v47 }
 0x17c   :  { %v281_v49 = vpop.f32.mrb[24].mxu0 }
 0x17d   :  { %v283_v50 = vpop.f32.mrb[25].mxu0  ;;  %873 = vmatprep.mubr.f32.mxu1 %v281_v49 }
 0x180   :  { %v286_v51 = vpop.f32.mrb[26].mxu0 }
 0x181   :  { %v288_v52 = vpop.f32.mrb[27].mxu0  ;;  %874 = vmatmul.mubr.f32.gmra.mrb[28].mxu1 %v286_v51 }
 0x184   :  { %v291_v53 = vpop.f32.mrb[28].mxu0 }
 0x185   :  { %v293_v54 = vpop.f32.mrb[29].mxu0  ;;  %876 = vmatprep.mubr.f32.mxu1 %v291_v53 }
 0x188   :  { %v296_v55 = vpop.f32.mrb[30].mxu0 }
 0x189   :  { %v298_v56 = vpop.f32.mrb[31].mxu0  ;;  %877 = vmatmul.mubr.f32.gmra.mrb[30].mxu1 %v296_v55 }
 0x18c   :  { %v301_v57 = vpop.f32.mrb[32].mxu0 }
 0x18d   :  { %v303_v58 = vpop.f32.mrb[33].mxu0  ;;  %879 = vmatprep.mubr.f32.mxu1 %v301_v57 }
 0x190   :  { %v306_v59 = vpop.f32.mrb[34].mxu0 }
 0x191   :  { %v308_v60 = vpop.f32.mrb[35].mxu0  ;;  %880 = vmatmul.mubr.f32.gmra.mrb[32].mxu1 %v306_v59 }
 0x194   :  { %v311_v61 = vpop.f32.mrb[36].mxu0 }
 0x195   :  { %v313_v62 = vpop.f32.mrb[37].mxu0  ;;  %882 = vmatprep.mubr.f32.mxu1 %v311_v61 }
 0x198   :  { %v316_v63 = vpop.f32.mrb[38].mxu0 }
 0x199   :  { %v318_v1 = vpop.f32.mrb[39].mxu0  ;;  %883 = vmatmul.mubr.f32.gmra.mrb[34].mxu1 %v316_v63 }
 0x19c   :  { %v321_v0 = vpop.f32.mrb[40].mxu0 }
 0x19d   :  { %v323_v2 = vpop.f32.mrb[41].mxu0  ;;  %885 = vmatprep.mubr.f32.mxu1 %v321_v0 }
 0x1a0   :  { %v326_v3 = vpop.f32.mrb[42].mxu0 }
 0x1a1   :  { %v328_v4 = vpop.f32.mrb[43].mxu0  ;;  %886 = vmatmul.mubr.f32.gmra.mrb[36].mxu1 %v326_v3 }
 0x1a4   :  { %v331_v5 = vpop.f32.mrb[44].mxu0 }
 0x1a5   :  { %v333_v6 = vpop.f32.mrb[45].mxu0  ;;  %888 = vmatprep.mubr.f32.mxu1 %v331_v5 }
 0x1a8   :  { %v336_v7 = vpop.f32.mrb[46].mxu0 }
 0x1a9   :  { %v338_v8 = vpop.f32.mrb[47].mxu0  ;;  %889 = vmatmul.mubr.f32.gmra.mrb[38].mxu1 %v336_v7 }
 0x1aa   :  { %891 = vmatprep.mubr.f32.mxu1 %v1226_v11 }
 0x1ad   :  { %892 = vmatmul.mubr.f32.gmra.mrb[40].mxu1 %v1228_v15 }
 0x1ae   :  { %894 = vmatprep.mubr.f32.mxu1 %v1230_v19 }
 0x1b1   :  { %895 = vmatmul.mubr.f32.gmra.mrb[42].mxu1 %v1232_v23 }
 0x1b2   :  { %897 = vmatprep.mubr.f32.mxu1 %v1234_v27 }
 0x1b5   :  { %898 = vmatmul.mubr.f32.gmra.mrb[44].mxu1 %v1236_v31 }
 0x1b6   :  { %900 = vmatprep.mubr.f32.mxu1 %v371_v35 }
 0x1b9   :  { %901 = vmatmul.mubr.f32.gmra.mrb[46].mxu1 %v376_v39 }
 0x224   :  { %v857_v10 = vpop.f32.mrb[16].mxu1 }
 0x225   :  { %v475_v11 = vadd.f32 %v857_v10, %v1247_v9  ;;  %v469_v12 = vpop.f32.mrb[17].mxu1 }
 0x226   :  { %v470_v13 = vadd.f32 %v1247_v9, %v469_v12 }
 0x227   :  { %vm629_vm0 = vcmp.ge.f32.partialorder %v475_v11, 0.0  ;;  %v661_v14 = vmul.f32 0.01, %v475_v11 }
 0x228   :  { %vm628_vm1 = vcmp.ge.f32.partialorder %v470_v13, 0.0  ;;  %v660_v15 = vmul.f32 0.01, %v470_v13 }
 0x229   :  { %v693_v16 = vsel %vm629_vm0, %v475_v11, %v661_v14 }
 0x22a   :  { %725 = vst [vmem:[#allocation8 + $0x8] sm:$0xff] %v693_v16  ;;  %v692_v17 = vsel %vm628_vm1, %v470_v13, %v660_v15 }
 0x22b   :  { %724 = vst [vmem:[#allocation8] sm:$0xff] %v692_v17 }
 0x22c   :  { %v860_v18 = vpop.f32.mrb[18].mxu1 }
 0x22d   :  { %v485_v19 = vadd.f32 %v860_v18, %v1247_v9  ;;  %v479_v20 = vpop.f32.mrb[19].mxu1 }
 0x22e   :  { %v480_v21 = vadd.f32 %v1247_v9, %v479_v20 }
 0x22f   :  { %vm631_vm2 = vcmp.ge.f32.partialorder %v485_v19, 0.0  ;;  %v663_v22 = vmul.f32 0.01, %v485_v19 }
 0x230   :  { %vm630_vm3 = vcmp.ge.f32.partialorder %v480_v21, 0.0  ;;  %v662_v23 = vmul.f32 0.01, %v480_v21 }
 0x231   :  { %v695_v24 = vsel %vm631_vm2, %v485_v19, %v663_v22 }
 0x232   :  { %727 = vst [vmem:[#allocation8 + $0x18] sm:$0xff] %v695_v24  ;;  %v694_v25 = vsel %vm630_vm3, %v480_v21, %v662_v23 }
 0x233   :  { %726 = vst [vmem:[#allocation8 + $0x10] sm:$0xff] %v694_v25 }
 0x234   :  { %v863_v26 = vpop.f32.mrb[20].mxu1 }
 0x235   :  { %v495_v27 = vadd.f32 %v863_v26, %v1247_v9  ;;  %v489_v28 = vpop.f32.mrb[21].mxu1 }
 0x236   :  { %v490_v29 = vadd.f32 %v1247_v9, %v489_v28 }
 0x237   :  { %vm633_vm4 = vcmp.ge.f32.partialorder %v495_v27, 0.0  ;;  %v665_v30 = vmul.f32 0.01, %v495_v27 }
 0x238   :  { %vm632_vm5 = vcmp.ge.f32.partialorder %v490_v29, 0.0  ;;  %v664_v31 = vmul.f32 0.01, %v490_v29 }
 0x239   :  { %v697_v32 = vsel %vm633_vm4, %v495_v27, %v665_v30 }
 0x23a   :  { %729 = vst [vmem:[#allocation8 + $0x28] sm:$0xff] %v697_v32  ;;  %v696_v33 = vsel %vm632_vm5, %v490_v29, %v664_v31 }
 0x23b   :  { %728 = vst [vmem:[#allocation8 + $0x20] sm:$0xff] %v696_v33 }
 0x23c   :  { %v866_v34 = vpop.f32.mrb[22].mxu1 }
 0x23d   :  { %v505_v35 = vadd.f32 %v866_v34, %v1247_v9  ;;  %v499_v36 = vpop.f32.mrb[23].mxu1 }
 0x23e   :  { %v500_v37 = vadd.f32 %v1247_v9, %v499_v36 }
 0x23f   :  { %vm635_vm6 = vcmp.ge.f32.partialorder %v505_v35, 0.0  ;;  %v667_v38 = vmul.f32 0.01, %v505_v35 }
 0x240   :  { %vm634_vm7 = vcmp.ge.f32.partialorder %v500_v37, 0.0  ;;  %v666_v39 = vmul.f32 0.01, %v500_v37 }
 0x241   :  { %v699_v40 = vsel %vm635_vm6, %v505_v35, %v667_v38 }
 0x242   :  { %731 = vst [vmem:[#allocation8 + $0x38] sm:$0xff] %v699_v40  ;;  %v698_v41 = vsel %vm634_vm7, %v500_v37, %v666_v39 }
 0x243   :  { %730 = vst [vmem:[#allocation8 + $0x30] sm:$0xff] %v698_v41 }
 0x244   :  { %v869_v42 = vpop.f32.mrb[24].mxu1 }
 0x245   :  { %v515_v43 = vadd.f32 %v869_v42, %v1247_v9  ;;  %v509_v44 = vpop.f32.mrb[25].mxu1 }
 0x246   :  { %v510_v45 = vadd.f32 %v1247_v9, %v509_v44 }
 0x247   :  { %vm637_vm8 = vcmp.ge.f32.partialorder %v515_v43, 0.0  ;;  %v669_v46 = vmul.f32 0.01, %v515_v43 }
 0x248   :  { %vm636_vm9 = vcmp.ge.f32.partialorder %v510_v45, 0.0  ;;  %v668_v47 = vmul.f32 0.01, %v510_v45 }
 0x249   :  { %v701_v48 = vsel %vm637_vm8, %v515_v43, %v669_v46 }
 0x24a   :  { %733 = vst [vmem:[#allocation8 + $0x48] sm:$0xff] %v701_v48  ;;  %v700_v49 = vsel %vm636_vm9, %v510_v45, %v668_v47 }
 0x24b   :  { %732 = vst [vmem:[#allocation8 + $0x40] sm:$0xff] %v700_v49 }
 0x24c   :  { %v872_v50 = vpop.f32.mrb[26].mxu1 }
 0x24d   :  { %v525_v51 = vadd.f32 %v872_v50, %v1247_v9  ;;  %v519_v52 = vpop.f32.mrb[27].mxu1 }
 0x24e   :  { %v520_v53 = vadd.f32 %v1247_v9, %v519_v52 }
 0x24f   :  { %vm639_vm10 = vcmp.ge.f32.partialorder %v525_v51, 0.0  ;;  %v671_v54 = vmul.f32 0.01, %v525_v51 }
 0x250   :  { %vm638_vm11 = vcmp.ge.f32.partialorder %v520_v53, 0.0  ;;  %v670_v55 = vmul.f32 0.01, %v520_v53 }
 0x251   :  { %v703_v56 = vsel %vm639_vm10, %v525_v51, %v671_v54 }
 0x252   :  { %735 = vst [vmem:[#allocation8 + $0x58] sm:$0xff] %v703_v56  ;;  %v702_v57 = vsel %vm638_vm11, %v520_v53, %v670_v55 }
 0x253   :  { %734 = vst [vmem:[#allocation8 + $0x50] sm:$0xff] %v702_v57 }
 0x254   :  { %v875_v58 = vpop.f32.mrb[28].mxu1 }
 0x255   :  { %v535_v59 = vadd.f32 %v875_v58, %v1247_v9  ;;  %v529_v60 = vpop.f32.mrb[29].mxu1 }
 0x256   :  { %v530_v61 = vadd.f32 %v1247_v9, %v529_v60 }
 0x257   :  { %vm641_vm12 = vcmp.ge.f32.partialorder %v535_v59, 0.0  ;;  %v673_v62 = vmul.f32 0.01, %v535_v59 }
 0x258   :  { %vm640_vm13 = vcmp.ge.f32.partialorder %v530_v61, 0.0  ;;  %v672_v63 = vmul.f32 0.01, %v530_v61 }
 0x259   :  { %v705_v1 = vsel %vm641_vm12, %v535_v59, %v673_v62 }
 0x25a   :  { %737 = vst [vmem:[#allocation8 + $0x68] sm:$0xff] %v705_v1  ;;  %v704_v0 = vsel %vm640_vm13, %v530_v61, %v672_v63 }
 0x25b   :  { %736 = vst [vmem:[#allocation8 + $0x60] sm:$0xff] %v704_v0 }
 0x25c   :  { %v878_v2 = vpop.f32.mrb[30].mxu1 }
 0x25d   :  { %v545_v3 = vadd.f32 %v878_v2, %v1247_v9  ;;  %v539_v4 = vpop.f32.mrb[31].mxu1 }
 0x25e   :  { %v540_v5 = vadd.f32 %v1247_v9, %v539_v4 }
 0x25f   :  { %vm643_vm14 = vcmp.ge.f32.partialorder %v545_v3, 0.0  ;;  %v675_v6 = vmul.f32 0.01, %v545_v3 }
 0x260   :  { %vm642_vm15 = vcmp.ge.f32.partialorder %v540_v5, 0.0  ;;  %v674_v7 = vmul.f32 0.01, %v540_v5 }
 0x261   :  { %v707_v8 = vsel %vm643_vm14, %v545_v3, %v675_v6 }
 0x262   :  { %739 = vst [vmem:[#allocation8 + $0x78] sm:$0xff] %v707_v8  ;;  %v706_v10 = vsel %vm642_vm15, %v540_v5, %v674_v7 }
 0x263   :  { %738 = vst [vmem:[#allocation8 + $0x70] sm:$0xff] %v706_v10 }
 0x264   :  { %v881_v11 = vpop.f32.mrb[32].mxu1 }
 0x265   :  { %v555_v12 = vadd.f32 %v881_v11, %v1247_v9  ;;  %v549_v13 = vpop.f32.mrb[33].mxu1 }
 0x266   :  { %v550_v14 = vadd.f32 %v1247_v9, %v549_v13 }
 0x267   :  { %vm645_vm0 = vcmp.ge.f32.partialorder %v555_v12, 0.0  ;;  %v677_v15 = vmul.f32 0.01, %v555_v12 }
 0x268   :  { %vm644_vm1 = vcmp.ge.f32.partialorder %v550_v14, 0.0  ;;  %v676_v16 = vmul.f32 0.01, %v550_v14 }
 0x269   :  { %v709_v17 = vsel %vm645_vm0, %v555_v12, %v677_v15 }
 0x26a   :  { %741 = vst [vmem:[#allocation8 + $0x88] sm:$0xff] %v709_v17  ;;  %v708_v18 = vsel %vm644_vm1, %v550_v14, %v676_v16 }
 0x26b   :  { %740 = vst [vmem:[#allocation8 + $0x80] sm:$0xff] %v708_v18 }
 0x26c   :  { %v884_v19 = vpop.f32.mrb[34].mxu1 }
 0x26d   :  { %v565_v20 = vadd.f32 %v884_v19, %v1247_v9  ;;  %v559_v21 = vpop.f32.mrb[35].mxu1 }
 0x26e   :  { %v560_v22 = vadd.f32 %v1247_v9, %v559_v21 }
 0x26f   :  { %vm647_vm2 = vcmp.ge.f32.partialorder %v565_v20, 0.0  ;;  %v679_v23 = vmul.f32 0.01, %v565_v20 }
 0x270   :  { %vm646_vm3 = vcmp.ge.f32.partialorder %v560_v22, 0.0  ;;  %v678_v24 = vmul.f32 0.01, %v560_v22 }
 0x271   :  { %v711_v25 = vsel %vm647_vm2, %v565_v20, %v679_v23 }
 0x272   :  { %743 = vst [vmem:[#allocation8 + $0x98] sm:$0xff] %v711_v25  ;;  %v710_v26 = vsel %vm646_vm3, %v560_v22, %v678_v24 }
 0x273   :  { %742 = vst [vmem:[#allocation8 + $0x90] sm:$0xff] %v710_v26 }
 0x274   :  { %v887_v27 = vpop.f32.mrb[36].mxu1 }
 0x275   :  { %v575_v28 = vadd.f32 %v887_v27, %v1247_v9  ;;  %v569_v29 = vpop.f32.mrb[37].mxu1 }
 0x276   :  { %v570_v30 = vadd.f32 %v1247_v9, %v569_v29 }
 0x277   :  { %vm649_vm4 = vcmp.ge.f32.partialorder %v575_v28, 0.0  ;;  %v681_v31 = vmul.f32 0.01, %v575_v28 }
 0x278   :  { %vm648_vm5 = vcmp.ge.f32.partialorder %v570_v30, 0.0  ;;  %v680_v32 = vmul.f32 0.01, %v570_v30 }
 0x279   :  { %v713_v33 = vsel %vm649_vm4, %v575_v28, %v681_v31 }
 0x27a   :  { %745 = vst [vmem:[#allocation8 + $0xa8] sm:$0xff] %v713_v33  ;;  %v712_v34 = vsel %vm648_vm5, %v570_v30, %v680_v32 }
 0x27b   :  { %744 = vst [vmem:[#allocation8 + $0xa0] sm:$0xff] %v712_v34 }
 0x27c   :  { %v890_v35 = vpop.f32.mrb[38].mxu1 }
 0x27d   :  { %v585_v36 = vadd.f32 %v890_v35, %v1247_v9  ;;  %v579_v37 = vpop.f32.mrb[39].mxu1 }
 0x27e   :  { %v580_v38 = vadd.f32 %v1247_v9, %v579_v37 }
 0x27f   :  { %vm651_vm6 = vcmp.ge.f32.partialorder %v585_v36, 0.0  ;;  %v683_v39 = vmul.f32 0.01, %v585_v36 }
 0x280   :  { %vm650_vm7 = vcmp.ge.f32.partialorder %v580_v38, 0.0  ;;  %v682_v40 = vmul.f32 0.01, %v580_v38  ;;  %v893_v41 = vpop.f32.mrb[40].mxu1 }
 0x281   :  { %v715_v42 = vsel %vm651_vm6, %v585_v36, %v683_v39  ;;  %v595_v43 = vadd.f32 %v893_v41, %v1247_v9  ;;  %v589_v44 = vpop.f32.mrb[41].mxu1 }
 0x282   :  { %747 = vst [vmem:[#allocation8 + $0xb8] sm:$0xff] %v715_v42  ;;  %v714_v45 = vsel %vm650_vm7, %v580_v38, %v682_v40  ;;  %v590_v46 = vadd.f32 %v1247_v9, %v589_v44 }
 0x283   :  { %746 = vst [vmem:[#allocation8 + $0xb0] sm:$0xff] %v714_v45  ;;  %vm653_vm8 = vcmp.ge.f32.partialorder %v595_v43, 0.0  ;;  %v685_v47 = vmul.f32 0.01, %v595_v43 }
 0x284   :  { %vm652_vm9 = vcmp.ge.f32.partialorder %v590_v46, 0.0  ;;  %v684_v48 = vmul.f32 0.01, %v590_v46  ;;  %v896_v49 = vpop.f32.mrb[42].mxu1 }
 0x285   :  { %v717_v50 = vsel %vm653_vm8, %v595_v43, %v685_v47  ;;  %v605_v51 = vadd.f32 %v896_v49, %v1247_v9  ;;  %v599_v52 = vpop.f32.mrb[43].mxu1 }
 0x286   :  { %749 = vst [vmem:[#allocation8 + $0xc8] sm:$0xff] %v717_v50  ;;  %v716_v53 = vsel %vm652_vm9, %v590_v46, %v684_v48  ;;  %v600_v54 = vadd.f32 %v1247_v9, %v599_v52 }
 0x287   :  { %748 = vst [vmem:[#allocation8 + $0xc0] sm:$0xff] %v716_v53  ;;  %vm655_vm10 = vcmp.ge.f32.partialorder %v605_v51, 0.0  ;;  %v687_v55 = vmul.f32 0.01, %v605_v51 }
 0x288   :  { %vm654_vm11 = vcmp.ge.f32.partialorder %v600_v54, 0.0  ;;  %v686_v56 = vmul.f32 0.01, %v600_v54  ;;  %v899_v57 = vpop.f32.mrb[44].mxu1 }
 0x289   :  { %v719_v58 = vsel %vm655_vm10, %v605_v51, %v687_v55  ;;  %v615_v59 = vadd.f32 %v899_v57, %v1247_v9  ;;  %v609_v60 = vpop.f32.mrb[45].mxu1 }
 0x28a   :  { %751 = vst [vmem:[#allocation8 + $0xd8] sm:$0xff] %v719_v58  ;;  %v718_v61 = vsel %vm654_vm11, %v600_v54, %v686_v56  ;;  %v610_v62 = vadd.f32 %v1247_v9, %v609_v60 }
 0x28b   :  { %750 = vst [vmem:[#allocation8 + $0xd0] sm:$0xff] %v718_v61  ;;  %vm657_vm12 = vcmp.ge.f32.partialorder %v615_v59, 0.0  ;;  %v689_v63 = vmul.f32 0.01, %v615_v59 }
 0x28c   :  { %vm656_vm13 = vcmp.ge.f32.partialorder %v610_v62, 0.0  ;;  %v688_v1 = vmul.f32 0.01, %v610_v62  ;;  %v902_v0 = vpop.f32.mrb[46].mxu1 }
 0x28d   :  { %v721_v2 = vsel %vm657_vm12, %v615_v59, %v689_v63  ;;  %v625_v3 = vadd.f32 %v902_v0, %v1247_v9  ;;  %v619_v4 = vpop.f32.mrb[47].mxu1 }
 0x28e   :  { %753 = vst [vmem:[#allocation8 + $0xe8] sm:$0xff] %v721_v2  ;;  %v720_v5 = vsel %vm656_vm13, %v610_v62, %v688_v1  ;;  %v620_v6 = vadd.f32 %v1247_v9, %v619_v4 }
 0x28f   :  { %752 = vst [vmem:[#allocation8 + $0xe0] sm:$0xff] %v720_v5  ;;  %vm659_vm14 = vcmp.ge.f32.partialorder %v625_v3, 0.0  ;;  %v691_v7 = vmul.f32 0.01, %v625_v3 }
 0x290   :  { %vm658_vm15 = vcmp.ge.f32.partialorder %v620_v6, 0.0  ;;  %v690_v8 = vmul.f32 0.01, %v620_v6 }
 0x291   :  { %v723_v10 = vsel %vm659_vm14, %v625_v3, %v691_v7 }
 0x292   :  { %755 = vst [vmem:[#allocation8 + $0xf8] sm:$0xff] %v723_v10  ;;  %v722_v11 = vsel %vm658_vm15, %v620_v6, %v690_v8 }
 0x293   :  { %754 = vst [vmem:[#allocation8 + $0xf0] sm:$0xff] %v722_v11 }
 0x294   :  { %1101 = shalt.err (!%p1098_p0)
}
 0x295   :  { %s1102_s8 = scalar_lea.hbm %s1300_s4, 4096 }
 0x296   :  { %p1103_p1 = scmp.ne.s32.totalorder %s1300_s4, %s1102_s8  ;;  %p1106_p2 = scmp.lt.u32.totalorder %s1102_s8, %s1300_s4 }
 0x298   :  { %p1108_p3 = pnand %p1106_p2, %p1103_p1 }
 0x29a   :  { %1111 = shalt.err (!%p1108_p3)
}
 0x29b   :  { %767 = dma.vmem_to_hbm [thread:$0]  %s762_s30, 4096, %s1300_s4, [#allocation4], %s1119_s25, %s1119_s25, %s1120_s26  }
 0x29c   :  { %1116 = dma.done.wait [#allocation4], 4096  }
 0x29d   :  { %1117 = vsyncadd [#allocation4], 4294963200 }
 0x29e   :  { %771 = vsyncpa [#allocation3], 1 }
 0x29f   :  { %772 = vsyncpa [#allocation6], 1 }
 0x2a0   :  { %773 = vsyncpa [#allocation4], 1 }

</bundles_post_ra>
